<compile_context>
chip_gen: v7x
topology: tpu7x:2x2x1
jax: 0.10.0
libtpu: 0.0.40
codegen_flags: <defaults>
</compile_context>

<pallas_src>
from functools import partial

import jax
import jax.numpy as jnp
from jax.experimental import pallas as pl
from jax.experimental.pallas import tpu as pltpu

_SUBLANE = 16   # bf16 sublane packing -> keep batch tiles a multiple of 16


def _round_up(n, m):
    return ((n + m - 1) // m) * m


def _cdiv(a, b):
    return (a + b - 1) // b


def _pick_tile(batch, max_tile_b):
    """Pick a batch tile that is a multiple of 16, large enough to amortize
    per-grid-step overhead, and yields >= 2 grid steps when there is enough
    work (so v7x can shard the parallel axis across both TensorCores)."""
    min_padded = _round_up(batch, _SUBLANE)
    n_steps = max(_cdiv(min_padded, max_tile_b), 1)
    if min_padded >= 2 * _SUBLANE:
        n_steps = max(n_steps, 2)
    tile_b = _round_up(_cdiv(min_padded, n_steps), _SUBLANE)
    padded_batch = _round_up(min_padded, tile_b)
    return tile_b, padded_batch


def policy_kernel(x_ref, w123_ref, b123_ref, w4_ref, b4_ref, o_ref):
    # In-kernel f32 -> bf16 cast of the activations (saves a wrapper HBM pass).
    x = x_ref[...].astype(w123_ref.dtype)
    # Fused Linear1..Linear3 (no nonlinearity between them in the original
    # nn.Sequential); bf16 operands, f32 MXU accumulation, f32 bias add.
    h = jnp.dot(x, w123_ref[...], preferred_element_type=jnp.float32) + b123_ref[...]
    # LeakyReLU (PyTorch default negative_slope = 0.01)
    h = jnp.maximum(h, 0.01 * h)
    # Final Linear(hidden -> out_dim); bf16 store, last dim == full array dim.
    o = jnp.dot(h.astype(w4_ref.dtype), w4_ref[...],
                preferred_element_type=jnp.float32) + b4_ref[...]
    o_ref[...] = o.astype(o_ref.dtype)


def prepare_params(params, compute_dtype=jnp.bfloat16):
    """Collapse the activation-free 3-layer linear chain (f32 math, then cast
    the fused weight to bf16). No output padding — the kernel stores the true
    out_dim columns."""
    w123 = params["w1"] @ params["w2"] @ params["w3"]                         # (state, hidden)
    b123 = (params["b1"] @ params["w2"] + params["b2"]) @ params["w3"] + params["b3"]
    return {
        "w123": w123.astype(compute_dtype),
        "b123": b123.astype(jnp.float32),
        "w4": params["w4"].astype(compute_dtype),
        "b4": params["b4"].astype(jnp.float32),
    }


@partial(jax.jit, static_argnames=("max_tile_b",))
def policy_forward(x, w123, b123, w4, b4, *, max_tile_b=2048):
    """x: (batch, state_dim) f32. Returns (batch, out_dim) bf16."""
    batch, state_dim = x.shape
    hidden = w123.shape[1]
    out_dim = w4.shape[1]

    tile_b, padded_batch = _pick_tile(batch, max_tile_b)
    if padded_batch != batch:
        x = jnp.pad(x, ((0, padded_batch - batch), (0, 0)))

    grid = (padded_batch // tile_b,)
    resident = lambda i: (0, 0)   # weights/biases: same block every grid step

    flops = 2 * padded_batch * (state_dim * hidden + hidden * out_dim)
    bytes_accessed = (padded_batch * state_dim * 4            # x (f32 in)
                      + padded_batch * out_dim * 2            # out (bf16)
                      + w123.size * 2 + b123.size * 4
                      + w4.size * 2 + b4.size * 4)

    out = pl.pallas_call(
        policy_kernel,
        out_shape=jax.ShapeDtypeStruct((padded_batch, out_dim), jnp.bfloat16),
        grid=grid,
        in_specs=[
            pl.BlockSpec((tile_b, state_dim), lambda i: (i, 0)),   # x tile (f32)
            pl.BlockSpec(w123.shape, resident),
            pl.BlockSpec(b123.shape, resident),
            pl.BlockSpec(w4.shape, resident),
            pl.BlockSpec(b4.shape, resident),
        ],
        out_specs=pl.BlockSpec((tile_b, out_dim), lambda i: (i, 0)),
        compiler_params=pltpu.CompilerParams(
            dimension_semantics=("parallel",)),
        cost_estimate=pl.CostEstimate(
            flops=flops, transcendentals=0, bytes_accessed=bytes_accessed),
    )(x, w123, b123, w4, b4)

    return out[:batch]


def init_params(key, state_dim, hidden_dim, output_dim):
    """Deterministic synthetic init (uniform, PyTorch-Linear-like fan_in bound).
    Weights stored pre-transposed as (in_features, out_features)."""
    dims = [(state_dim, hidden_dim),
            (hidden_dim, hidden_dim * 2),
            (hidden_dim * 2, hidden_dim),
            (hidden_dim, output_dim)]
    params = {}
    for i, (fan_in, fan_out) in enumerate(dims, start=1):
        key, kw, kb = jax.random.split(key, 3)
        bound = 1.0 / jnp.sqrt(fan_in)
        params[f"w{i}"] = jax.random.uniform(
            kw, (fan_in, fan_out), jnp.float32, -bound, bound)
        params[f"b{i}"] = jax.random.uniform(
            kb, (1, fan_out), jnp.float32, -bound, bound)
    return params


def reference_forward(x, params):
    """Pure-JAX f32 reference mirroring the original (un-collapsed) module."""
    h = x @ params["w1"] + params["b1"]
    h = h @ params["w2"] + params["b2"]
    h = h @ params["w3"] + params["b3"]
    h = jnp.where(h > 0, h, 0.01 * h)
    return h @ params["w4"] + params["b4"]


if __name__ == "__main__":
    state_dim, hidden_dim, output_dim = 8, 32, 4
    batch = 2

    key = jax.random.PRNGKey(0)
    key, kx = jax.random.split(key)
    x = jax.random.normal(kx, (batch, state_dim), jnp.float32)
    params = init_params(key, state_dim, hidden_dim, output_dim)

    fused = prepare_params(params)            # collapse + bf16 cast (one-time)
    out = policy_forward(x, fused["w123"], fused["b123"],
                         fused["w4"], fused["b4"])
    out = jax.block_until_ready(out)

    ref = reference_forward(x, params)
    assert out.shape == (batch, output_dim)
    # bf16 weights + bf16 output with f32 accumulation -> relaxed tolerance.
    out_f32 = out.astype(jnp.float32)
    assert jnp.allclose(out_f32, ref, atol=5e-2, rtol=5e-2), \
        float(jnp.max(jnp.abs(out_f32 - ref)))

    print("KERNEL_OK")
</pallas_src>

<mosaic_0001>
module attributes {stable_mosaic.version = 11 : i64} {
  func.func @policy_kernel(%arg0: i32, %arg1: memref<16x8xf32, #tpu.memory_space<vmem>>, %arg2: memref<8x32xbf16, #tpu.memory_space<vmem>>, %arg3: memref<1x32xf32, #tpu.memory_space<vmem>>, %arg4: memref<32x4xbf16, #tpu.memory_space<vmem>>, %arg5: memref<1x4xf32, #tpu.memory_space<vmem>>, %arg6: memref<16x4xbf16, #tpu.memory_space<vmem>>) attributes {dimension_semantics = [#tpu.dimension_semantics<parallel>], iteration_bounds = array<i64: 1>, scalar_prefetch = 0 : i64, scratch_operands = 0 : i64, tpu.core_type = #tpu.core_type<tc>, window_params = [{transform_indices = @transform_0, window_bounds = array<i64: 16, 8>}, {pipeline_mode = #tpu.pipeline_mode<synchronous>, transform_indices = @transform_1, window_bounds = array<i64: 8, 32>}, {pipeline_mode = #tpu.pipeline_mode<synchronous>, transform_indices = @transform_2, window_bounds = array<i64: 1, 32>}, {pipeline_mode = #tpu.pipeline_mode<synchronous>, transform_indices = @transform_3, window_bounds = array<i64: 32, 4>}, {pipeline_mode = #tpu.pipeline_mode<synchronous>, transform_indices = @transform_4, window_bounds = array<i64: 1, 4>}, {transform_indices = @transform_5, window_bounds = array<i64: 16, 4>}]} {
    %c0 = arith.constant 0 : index
    %c0_0 = arith.constant 0 : index
    %0 = vector.load %arg1[%c0, %c0_0] : memref<16x8xf32, #tpu.memory_space<vmem>>, vector<16x8xf32>
    %1 = arith.truncf %0 : vector<16x8xf32> to vector<16x8xbf16>
    %c0_1 = arith.constant 0 : index
    %c0_2 = arith.constant 0 : index
    %2 = vector.load %arg2[%c0_1, %c0_2] : memref<8x32xbf16, #tpu.memory_space<vmem>>, vector<8x32xbf16>
    %cst = arith.constant dense<0.000000e+00> : vector<16x32xf32>
    %3 = tpu.matmul %1, %2, %cst {dimension_numbers = #tpu.dot_dimension_numbers<[1], [0], [0], [1], [0, 0, 1, 1], [], []>} : vector<16x8xbf16>, vector<8x32xbf16>, vector<16x32xf32> -> vector<16x32xf32>
    %c0_3 = arith.constant 0 : index
    %c0_4 = arith.constant 0 : index
    %4 = vector.load %arg3[%c0_3, %c0_4] : memref<1x32xf32, #tpu.memory_space<vmem>>, vector<1x32xf32>
    %5 = vector.broadcast %4 : vector<1x32xf32> to vector<16x32xf32>
    %6 = arith.addf %3, %5 : vector<16x32xf32>
    %cst_5 = arith.constant 0.00999999977 : f32
    %7 = vector.broadcast %cst_5 : f32 to vector<16x32xf32>
    %8 = arith.mulf %7, %6 : vector<16x32xf32>
    %9 = arith.maximumf %6, %8 : vector<16x32xf32>
    %10 = arith.truncf %9 : vector<16x32xf32> to vector<16x32xbf16>
    %c0_6 = arith.constant 0 : index
    %c0_7 = arith.constant 0 : index
    %11 = vector.load %arg4[%c0_6, %c0_7] : memref<32x4xbf16, #tpu.memory_space<vmem>>, vector<32x4xbf16>
    %cst_8 = arith.constant dense<0.000000e+00> : vector<16x4xf32>
    %12 = tpu.matmul %10, %11, %cst_8 {dimension_numbers = #tpu.dot_dimension_numbers<[1], [0], [0], [1], [0, 0, 1, 1], [], []>} : vector<16x32xbf16>, vector<32x4xbf16>, vector<16x4xf32> -> vector<16x4xf32>
    %c0_9 = arith.constant 0 : index
    %c0_10 = arith.constant 0 : index
    %13 = vector.load %arg5[%c0_9, %c0_10] : memref<1x4xf32, #tpu.memory_space<vmem>>, vector<1x4xf32>
    %14 = vector.broadcast %13 : vector<1x4xf32> to vector<16x4xf32>
    %15 = arith.addf %12, %14 : vector<16x4xf32>
    %16 = arith.truncf %15 : vector<16x4xf32> to vector<16x4xbf16>
    %c0_11 = arith.constant 0 : index
    %c0_12 = arith.constant 0 : index
    %17 = vector.load %arg6[%c0_11, %c0_12] : memref<16x4xbf16, #tpu.memory_space<vmem>>, vector<16x4xbf16>
    tpu.vector_store %arg6[%c0_11, %c0_12], %16 {strides = array<i32>} : memref<16x4xbf16, #tpu.memory_space<vmem>>, vector<16x4xbf16>,
    return
  }
  func.func @transform_0(%arg0: i32) -> (i32, i32) {
    %c0_i32 = arith.constant 0 : i32
    %c0_i32_0 = arith.constant 0 : i32
    return %arg0, %c0_i32 : i32, i32
  }
  func.func @transform_1(%arg0: i32) -> (i32, i32) {
    %c0_i32 = arith.constant 0 : i32
    %c0_i32_0 = arith.constant 0 : i32
    %c0_i32_1 = arith.constant 0 : i32
    return %c0_i32, %c0_i32_0 : i32, i32
  }
  func.func @transform_2(%arg0: i32) -> (i32, i32) {
    %c0_i32 = arith.constant 0 : i32
    %c0_i32_0 = arith.constant 0 : i32
    %c0_i32_1 = arith.constant 0 : i32
    return %c0_i32, %c0_i32_0 : i32, i32
  }
  func.func @transform_3(%arg0: i32) -> (i32, i32) {
    %c0_i32 = arith.constant 0 : i32
    %c0_i32_0 = arith.constant 0 : i32
    %c0_i32_1 = arith.constant 0 : i32
    return %c0_i32, %c0_i32_0 : i32, i32
  }
  func.func @transform_4(%arg0: i32) -> (i32, i32) {
    %c0_i32 = arith.constant 0 : i32
    %c0_i32_0 = arith.constant 0 : i32
    %c0_i32_1 = arith.constant 0 : i32
    return %c0_i32, %c0_i32_0 : i32, i32
  }
  func.func @transform_5(%arg0: i32) -> (i32, i32) {
    %c0_i32 = arith.constant 0 : i32
    %c0_i32_0 = arith.constant 0 : i32
    return %arg0, %c0_i32 : i32, i32
  }
}

</mosaic_0001>

<bundles_post_ra>
// kernel: policy_forward.1
= control target key start
LH: loop header
LB: loop body
LE: loop exit
PB: predicated region body
PF: predicated region fallthrough
CT: control target
= control target key end

     0   :  { %vm36_vm0 = vcmask 1043456   ;;  %v202_v0 = vmov 0.0   ;;  %vm203_vm1 = vmmov 0   ;;  %vm32_vm2 = vcmask 64512   ;;  %s261_s1 = inlined_call_operand.vmem [shape: bf16[8,32], index: 1, kind: input, shape index: {}]   ;;  %s262_s0 = inlined_call_operand.vmem [shape: f32[16,8], index: 0, kind: input, shape index: {}]   ;;  %s263_s3 = inlined_call_operand.vmem [shape: bf16[32,4], index: 3, kind: input, shape index: {}]   ;;  %s264_s2 = inlined_call_operand.vmem [shape: f32[1,32], index: 2, kind: input, shape index: {}]   ;;  %s265_s4 = inlined_call_operand.vmem [shape: f32[1,4], index: 4, kind: input, shape index: {}]   ;;  %s266_s5 = inlined_call_operand.vmem [shape: bf16[16,4], index: 5, kind: output, shape index: {}]  }
   0x1   :  { %184 = vmatprep.subr.bf16.mxu0 %v202_v0  ;;  %v24_v1 = vld [vmem:[%s261_s1] sm:$0xf]  ;;  %186 = vmatprep.mubr.msk.bf16.mxu0 %vm203_vm1, %v202_v0  ;;  %v22_v3 = vld [vmem:[%s262_s0 + $0x8] sm:$0xff]  ;;  %vm109_vm3 = vcmask 261120   ;;  %vm162_vm4 = vcmask 27648  }
   0x2   :  { %v21_v2 = vld [vmem:[%s262_s0] sm:$0xff]  ;;  %v38_v4 = vsel %vm36_vm0, %v24_v1, 0  ;;  %190 = vmatprep.subr.bf16.mxu1 %v202_v0  ;;  %194 = vmatprep.mubr.msk.bf16.mxu1 %vm203_vm1, %v202_v0  ;;  %v201_v7 = vld [vmem:[%s263_s3 + $0x8] sm:$0xff]  }
   0x3   :  { %v23_v5 = vpack.c.bf16 %v22_v3, %v21_v2  ;;  %185 = vmatpush3.bf16.msra.mxu0 %v38_v4  ;;  %v200_v6 = vld [vmem:[%s263_s3] sm:$0xff]  }
   0x4   :  { %191 = vmatpush3.bf16.msra.mxu1 %v200_v6  ;;  %v169_v8 = vld [vmem:[%s264_s2] ss:$0 sm:$0xff] }
   0x5   :  { %192 = vmatprep.subr.bf16.mxu1 %v202_v0  ;;  %v171_v20 = vld [vmem:[%s265_s4] ss:$0 sm:$0xff] }
   0x6   :  { %187 = vmatmul.mubr.msk.bf16.vlgmr.msra.gmra.mrb[0].mxu0 %vm32_vm2, %v23_v5 }
   0x8   :  { %193 = vmatpush3.bf16.msra.mxu1 %v201_v7 }
  0xd9   :  { %v74_v9 = vpop.f32.mrb[0].mxu0 }
  0xda   :  { %v75_v10 = vadd.f32 %v169_v8, %v74_v9  ;;  %v188_v11 = vpop.f32.mrb[1].mxu0 }
  0xdb   :  { %v77_v12 = vpop.f32.mrb[2].mxu0 }
  0xdc   :  { %v81_v13 = vmul.f32 0.01, %v75_v10  ;;  %v78_v14 = vadd.f32 %v169_v8, %v77_v12  ;;  %v189_v15 = vpop.f32.mrb[3].mxu0 }
  0xde   :  { %v82_v16 = vmul.f32 0.01, %v78_v14  ;;  %v83_v17 = vmax.f32 %v75_v10, %v81_v13 }
  0xe0   :  { %v84_v18 = vmax.f32 %v78_v14, %v82_v16 }
  0xe2   :  { %v85_v19 = vpack.c.bf16 %v84_v18, %v83_v17 }
  0xe4   :  { %195 = vmatmul.mubr.msk.bf16.vlgmr.msra.gmra.mrb[0].mxu1 %vm109_vm3, %v85_v19 }
 0x1b7   :  { %v147_v21 = vpop.f32.mrb[0].mxu1 }
 0x1b8   :  { %v148_v22 = vadd.f32 %v171_v20, %v147_v21  ;;  %v196_v23 = vpop.f32.mrb[1].mxu1 }
 0x1b9   :  { %v150_v24 = vpop.f32.mrb[2].mxu1 }
 0x1ba   :  { %v177_v25 = vpack.c.bf16 %v148_v22, %v148_v22  ;;  %v151_v26 = vadd.f32 %v171_v20, %v150_v24  ;;  %v197_v27 = vpop.f32.mrb[3].mxu1 }
 0x1bc   :  { %163 = vst.msk [vmem:[%s266_s5] sm:$0xf] %vm162_vm4, %v177_v25  ;;  %v178_v28 = vpack.c.bf16 %v151_v26, %v151_v26 }
 0x1be   :  { %164 = vst.msk [vmem:[%s266_s5 + $0x4] sm:$0xf] %vm162_vm4, %v178_v28 }

</bundles_post_ra>
